<compile_context>
chip_gen: v5e
topology: v5e:2x2
jax: 0.10.0
libtpu: 0.0.40
codegen_flags: <defaults>
</compile_context>

<pallas_src>
import functools

import jax
import jax.numpy as jnp
from jax.experimental import pallas as pl
from jax.experimental.pallas import tpu as pltpu

_LANE = 128
_MAX_TIME_BLOCK = 1024            # measured copy roofline plateaus at 512-1024 lanes
_VMEM_BUDGET = 12 * 1024 * 1024   # bytes for the 4 live tiles (2x-buffered in + out)


def _pick_time_block(channels, time, itemsize):
    """Largest lane-dense time tile that divides T and fits the VMEM budget."""
    per_lane = 4 * channels * itemsize          # double-buffered input + output
    cap = max(_LANE, min(_MAX_TIME_BLOCK,
                         (_VMEM_BUDGET // max(per_lane, 1)) // _LANE * _LANE))
    if time <= cap:
        return time                             # full extent: always a legal block
    for tb in range(cap, 0, -_LANE):            # largest multiple of 128 dividing T
        if time % tb == 0:
            return tb
    # TODO(synk): T has no multiple-of-128 divisor <= cap; falling back to a
    # full-T block (correct, but very long sequences may need a vmem_limit bump
    # or an explicit remainder-tile path).
    return time


def _shuffle_strided_kernel(groups, cpg, x_ref, o_ref):
    # x_ref / o_ref: (C, time_block) VMEM tiles (batch dim squeezed).
    # For each group g, the cpg contiguous input rows [g*cpg, (g+1)*cpg)
    # scatter to output rows g, g+G, g+2G, ... — a pure sublane move.
    # TODO(synk): for bf16/int8 inputs where cpg is not a multiple of the
    # sublane packing (16 / 32), pack adjacent channels via pltpu.bitcast first
    # so the shuffle moves whole packed rows.
    for g in range(groups):                     # G is small (2-4) -> unrolled
        o_ref[pl.ds(g, cpg, stride=groups), :] = x_ref[pl.ds(g * cpg, cpg), :]


def _shuffle_transpose_kernel(groups, cpg, x_ref, o_ref):
    # Fallback: let Mosaic lower the sublane permute from reshape/transpose.
    c, t = x_ref.shape
    x = x_ref[...].reshape(groups, cpg, t)
    o_ref[...] = jnp.swapaxes(x, 0, 1).reshape(c, t)


def group_shuffle(x, groups, *, time_block=None):
    """Channel shuffle of x: (N, C, T) -> (N, C, T), same dtype."""
    n, c, t = x.shape
    if c % groups != 0:
        raise ValueError("channels must be divisible by groups")
    cpg = c // groups

    if time_block is None:
        time_block = _pick_time_block(c, t, jnp.dtype(x.dtype).itemsize)
    if t % time_block != 0:
        raise ValueError("time_block must divide T")
    if time_block != t and time_block % _LANE != 0:
        raise ValueError("time_block must be a multiple of 128 (or the full T)")

    grid = (n, t // time_block)
    block = pl.BlockSpec((None, c, time_block), lambda i, tt: (i, 0, tt))

    def run(kernel_body):
        return pl.pallas_call(
            kernel_body,
            out_shape=jax.ShapeDtypeStruct((n, c, t), x.dtype),
            grid_spec=pltpu.PrefetchScalarGridSpec(
                num_scalar_prefetch=0,
                grid=grid,
                in_specs=[block],
                out_specs=block,
            ),
            compiler_params=pltpu.CompilerParams(
                dimension_semantics=("parallel", "parallel"),
            ),
        )(x)

    strided = functools.partial(_shuffle_strided_kernel, groups, cpg)
    fallback = functools.partial(_shuffle_transpose_kernel, groups, cpg)
    try:
        out = run(strided)
        jax.block_until_ready(out)   # surface any lowering/runtime failure here
        return out
    except Exception:                # pragma: no cover - lowering fallback
        return run(fallback)


def group_shuffle_ref(x, groups):
    n, c, t = x.shape
    cpg = c // groups
    y = x.reshape(n, groups, cpg, t)
    y = jnp.transpose(y, (0, 2, 1, 3))
    return y.reshape(n, c, t)


if __name__ == "__main__":
    key = jax.random.PRNGKey(0)
    k1, k2 = jax.random.split(key)

    # Config 1: lane-dense multi-tile time grid (grid = (2, 4), 128-lane blocks).
    N1, C1, T1, G1 = 2, 16, 512, 2
    x1 = jax.random.normal(k1, (N1, C1, T1), dtype=jnp.float32)
    out1 = jax.block_until_ready(group_shuffle(x1, G1, time_block=128))
    ref1 = group_shuffle_ref(x1, G1)
    assert out1.shape == ref1.shape
    assert jnp.array_equal(out1, ref1), "mismatch vs reference (config 1)"

    # Config 2: auto tile pick (single full-T block), groups=4, cpg=2.
    N2, C2, T2, G2 = 2, 8, 256, 4
    x2 = jax.random.normal(k2, (N2, C2, T2), dtype=jnp.float32)
    out2 = jax.block_until_ready(group_shuffle(x2, G2))
    ref2 = group_shuffle_ref(x2, G2)
    assert out2.shape == ref2.shape
    assert jnp.array_equal(out2, ref2), "mismatch vs reference (config 2)"

    print("KERNEL_OK")
</pallas_src>

<mosaic_0001>
module attributes {stable_mosaic.version = 11 : i64} {
  func.func @_shuffle_strided_kernel(%arg0: i32, %arg1: i32, %arg2: memref<1x16x128xf32, #tpu.memory_space<vmem>>, %arg3: memref<1x16x128xf32, #tpu.memory_space<vmem>>) attributes {dimension_semantics = [#tpu.dimension_semantics<parallel>, #tpu.dimension_semantics<parallel>], iteration_bounds = array<i64: 2, 4>, scalar_prefetch = 0 : i64, scratch_operands = 0 : i64, tpu.core_type = #tpu.core_type<tc>, window_params = [{transform_indices = @transform_0, window_bounds = array<i64: 1, 16, 128>}, {transform_indices = @transform_1, window_bounds = array<i64: 1, 16, 128>}]} {
    %c0 = arith.constant 0 : index
    %c0_0 = arith.constant 0 : index
    %c0_1 = arith.constant 0 : index
    %0 = vector.load %arg2[%c0, %c0_0, %c0_1] : memref<1x16x128xf32, #tpu.memory_space<vmem>>, vector<1x8x128xf32>
    %1 = vector.shape_cast %0 : vector<1x8x128xf32> to vector<8x128xf32>
    %c0_2 = arith.constant 0 : index
    %c0_3 = arith.constant 0 : index
    %c0_4 = arith.constant 0 : index
    %2 = tpu.strided_load %arg3[%c0_2, %c0_3, %c0_4] {strides = array<i32: 1, 2, 1>} : memref<1x16x128xf32, #tpu.memory_space<vmem>>, vector<1x8x128xf32>
    %3 = vector.shape_cast %2 : vector<1x8x128xf32> to vector<8x128xf32>
    %4 = vector.shape_cast %1 : vector<8x128xf32> to vector<1x8x128xf32>
    tpu.strided_store %arg3[%c0_2, %c0_3, %c0_4], %4 {strides = array<i32: 1, 2, 1>} : memref<1x16x128xf32, #tpu.memory_space<vmem>>, vector<1x8x128xf32>
    %c0_5 = arith.constant 0 : index
    %c8 = arith.constant 8 : index
    %c0_6 = arith.constant 0 : index
    %5 = vector.load %arg2[%c0_5, %c8, %c0_6] : memref<1x16x128xf32, #tpu.memory_space<vmem>>, vector<1x8x128xf32>
    %6 = vector.shape_cast %5 : vector<1x8x128xf32> to vector<8x128xf32>
    %c0_7 = arith.constant 0 : index
    %c1 = arith.constant 1 : index
    %c0_8 = arith.constant 0 : index
    %7 = tpu.strided_load %arg3[%c0_7, %c1, %c0_8] {strides = array<i32: 1, 2, 1>} : memref<1x16x128xf32, #tpu.memory_space<vmem>>, vector<1x8x128xf32>
    %8 = vector.shape_cast %7 : vector<1x8x128xf32> to vector<8x128xf32>
    %9 = vector.shape_cast %6 : vector<8x128xf32> to vector<1x8x128xf32>
    tpu.strided_store %arg3[%c0_7, %c1, %c0_8], %9 {strides = array<i32: 1, 2, 1>} : memref<1x16x128xf32, #tpu.memory_space<vmem>>, vector<1x8x128xf32>
    return
  }
  func.func @transform_0(%arg0: i32, %arg1: i32) -> (i32, i32, i32) {
    %c0_i32 = arith.constant 0 : i32
    %c0_i32_0 = arith.constant 0 : i32
    return %arg0, %c0_i32, %arg1 : i32, i32, i32
  }
  func.func @transform_1(%arg0: i32, %arg1: i32) -> (i32, i32, i32) {
    %c0_i32 = arith.constant 0 : i32
    %c0_i32_0 = arith.constant 0 : i32
    return %arg0, %c0_i32, %arg1 : i32, i32, i32
  }
}

module attributes {stable_mosaic.version = 11 : i64} {
  func.func @_shuffle_transpose_kernel(%arg0: i32, %arg1: i32, %arg2: memref<1x16x128xf32, #tpu.memory_space<vmem>>, %arg3: memref<1x16x128xf32, #tpu.memory_space<vmem>>) attributes {dimension_semantics = [#tpu.dimension_semantics<parallel>, #tpu.dimension_semantics<parallel>], iteration_bounds = array<i64: 2, 4>, scalar_prefetch = 0 : i64, scratch_operands = 0 : i64, tpu.core_type = #tpu.core_type<tc>, window_params = [{transform_indices = @transform_0, window_bounds = array<i64: 1, 16, 128>}, {transform_indices = @transform_1, window_bounds = array<i64: 1, 16, 128>}]} {
    %c0 = arith.constant 0 : index
    %c0_0 = arith.constant 0 : index
    %c0_1 = arith.constant 0 : index
    %0 = vector.load %arg2[%c0, %c0_0, %c0_1] : memref<1x16x128xf32, #tpu.memory_space<vmem>>, vector<1x16x128xf32>
    %1 = vector.shape_cast %0 : vector<1x16x128xf32> to vector<16x128xf32>
    %2 = vector.shape_cast %1 : vector<16x128xf32> to vector<2x8x128xf32>
    %3 = tpu.transpose %2, [1, 0, 2] : vector<2x8x128xf32> -> vector<8x2x128xf32>
    %4 = vector.shape_cast %3 : vector<8x2x128xf32> to vector<16x128xf32>
    %c0_2 = arith.constant 0 : index
    %c0_3 = arith.constant 0 : index
    %c0_4 = arith.constant 0 : index
    %5 = vector.load %arg3[%c0_2, %c0_3, %c0_4] : memref<1x16x128xf32, #tpu.memory_space<vmem>>, vector<1x16x128xf32>
    %6 = vector.shape_cast %5 : vector<1x16x128xf32> to vector<16x128xf32>
    %7 = vector.shape_cast %4 : vector<16x128xf32> to vector<1x16x128xf32>
    tpu.vector_store %arg3[%c0_2, %c0_3, %c0_4], %7 {strides = array<i32>} : memref<1x16x128xf32, #tpu.memory_space<vmem>>, vector<1x16x128xf32>,
    return
  }
  func.func @transform_0(%arg0: i32, %arg1: i32) -> (i32, i32, i32) {
    %c0_i32 = arith.constant 0 : i32
    %c0_i32_0 = arith.constant 0 : i32
    return %arg0, %c0_i32, %arg1 : i32, i32, i32
  }
  func.func @transform_1(%arg0: i32, %arg1: i32) -> (i32, i32, i32) {
    %c0_i32 = arith.constant 0 : i32
    %c0_i32_0 = arith.constant 0 : i32
    return %arg0, %c0_i32, %arg1 : i32, i32, i32
  }
}

</mosaic_0001>

<bundles_post_ra>
// kernel: tpu_custom_call.1
= control target key start
LH: loop header
LB: loop body
LE: loop exit
PB: predicated region body
PF: predicated region fallthrough
CT: control target
= control target key end

     0   :  { %6 = vsyncpa [#allocation3], 0  ;;  %s652_s0 = inlined_call_operand.hbm [shape: f32[2,16,512], index: 0, kind: input, shape index: {}]   ;;  %s653_s1 = inlined_call_operand.hbm [shape: f32[2,16,512], index: 1, kind: output, shape index: {}]  }
   0x1   :  { %8 = vsyncpa [#allocation3 + $0x1], 0 }
   0x2   :  { %9 = vsyncpa [#allocation4], 0 }
   0x3   :  { %11 = vsyncpa [#allocation4 + $0x1], 0  ;;  %s510_s6 = smov 0   ;;  %s512_s7 = smov 0  }
   0x4   :  { %s514_s8 = smov 0   ;;  %s516_s9 = smov 0  }
   0x5   :  { %s518_s10 = smov 0   ;;  %s520_s11 = smov 0  }
   0x6   :  { %s522_s12 = smov 0   ;;  %s524_s13 = smov 0  }
   0x7 LB: > { %s264_s14 = sadd.s32 4294967295, %s492_s13   ;;  %s265_s15 = sadd.s32 4294967294, %s492_s13   ;;  %s492_s13 = sphi %s524_s13, %s17_s13   ;;  %s488_s12 = sphi %s522_s12, %s667_s12   ;;  %s484_s11 = sphi %s520_s11, %s666_s11   ;;  %s480_s10 = sphi %s518_s10, %s665_s10   ;;  %s476_s9 = sphi %s516_s9, %s664_s9   ;;  %s472_s8 = sphi %s514_s8, %s663_s8   ;;  %s468_s7 = sphi %s512_s7, %s662_s7   ;;  %s464_s6 = sphi %s510_s6, %s661_s6  }
   0x8   : > { %s26_s16 = sadd.s32 1, %s484_s11  ;;  %s29_s17 = sadd.s32 1, %s488_s12 }
   0x9   : > { %p27_p0 = scmp.ge.s32.totalorder %s26_s16, 4  ;;  %s38_s18 = sadd.s32 1, %s472_s8 }
   0xa   : > { %p45_p1 = scmp.ne.s32.totalorder %s472_s8, %s468_s7  ;;  %p46_p2 = scmp.eq.s32.totalorder %s492_s13, 0 }
   0xb   : > { %s669_s16 = smov (%p27_p0, %s26_s16), 0  ;;  %s671_s17 = smov (!%p27_p0, %s29_s17), %s488_s12 }
   0xc   : > { %s34_s19 = ssub.s32 %s484_s11, %s669_s16  ;;  %p563_p3 = por %p46_p2, %p45_p1 }
   0xd   : > { %p31_p4 = scmp.ge.s32.totalorder %s671_s17, 2  ;;  %p51_p5 = scmp.ne.s32.totalorder %s468_s7, %s464_s6 }
   0xe   : > { %p52_p6 = scmp.eq.s32.totalorder %s264_s14, 0  ;;  %p77_p7 = scmp.eq.s32.totalorder %s264_s14, 7 }
   0xf   : > { %s673_s17 = smov (%p31_p4, %s671_s17), 0  ;;  %p83_p10 = scmp.eq.s32.totalorder %s265_s15, 7 }
  0x10   : > { %656 = sst [smem:[#allocation8_spill]] %s673_s17  ;;  %p571_p8 = por %p52_p6, %p51_p5 }
  0x11   : > { %p575_p9 = por %p77_p7, %p45_p1  ;;  %s33_s23 = ssub.s32 %s488_s12, %s673_s17 }
  0x12   : > { %s35_s24 = sor.u32 %s34_s19, %s33_s23  ;;  %p581_p12 = por %p83_p10, %p51_p5 }
  0x13   : > { %p36_p11 = scmp.eq.s32.totalorder %s35_s24, 0  ;;  %p292_p13 = scmp.lt.s32.totalorder %s492_s13, 8 }
  0x14   : > { %s103_s26 = sand.u32 1, %s472_s8   ;;  %s269_s29 = sshll.u32 %s488_s12, 3 }
  0x15   : > { %s588_s27 = scalar_select %p36_p11, %s472_s8, %s38_s18  }
  0x16   : > { %s268_s28 = sshll.u32 %s103_s26, 4  ;;  %s111_s30 = sadd.s32 %s484_s11, %s269_s29 }
  0x17   : > { %s107_s2 = scalar_lea.vmem [#allocation2], %s268_s28  ;;  %s270_s4 = sshll.u32 %s111_s30, 3 }
  0x18   : > { %s116_s3 = sshll.u32 %s107_s2, 4  ;;  %s113_s15 = scalar_lea.hbm %s652_s0, %s270_s4  ;;  %s117_s3 = int_to_ptr.vmem [resolvable:$true] %s116_s3 }
  0x19   : > { %p285_p0 = pnand %p292_p13, %p563_p3  ;;  %s114_s19 = sshll.u32 %s113_s15, 4  ;;  %s115_s19 = int_to_ptr.hbm [resolvable:$true] %s114_s19 }
  0x1a   : > { %s104_s23 = scalar_lea.sflag [#allocation3], %s103_s26  ;;  %s494_s18 = smov 512  }
  0x1b   : > { %s495_s24 = smov 128   ;;  %s496_s17 = smov 8  }
  0x1c   : > { %287 = dma.hbm_to_vmem [thread:$0]  (!%p285_p0), %s115_s19, 256, %s117_s3, %s104_s23, %s494_s18, %s495_s24, %s496_s17  }
  0x1d   : > { %p271_p1 = scmp.ge.s32.totalorder %s492_s13, 1  ;;  %p124_p2 = scmp.lt.s32.totalorder %s492_s13, 9 }
  0x1f   : > { %p125_p4 = pnand %p271_p1, %p124_p2 }
  0x20   : > { %s600_s28 = sand.u32 (!%p125_p4), 1, %s468_s7  }
  0x21   : > { %128 = sbr.rel (%p125_p4) target bundleno = 58 (0x3a), region = 24  ;;  %s272_s29 = sshll.u32 (!%p125_p4), %s600_s28, 4 }
  0x22   : > { %s131_s20 = scalar_lea.sflag (!%p125_p4), [#allocation3], %s600_s28  ;;  %s134_s30 = scalar_lea.vmem (!%p125_p4), [#allocation2], %s272_s29 }
  0x26   : > { %455 = dma.done.wait (%p571_p8), %s131_s20, 256  }
  0x27   : > { %457 = vsyncadd (%p571_p8), %s131_s20, 4294967040  ;;  %s276_s17 = sshll.u32 %s480_s10, 3  ;;  %s153_s26 = scalar_lea.vmem [#allocation5], %s272_s29  ;;  %v154_v0 = vld [vmem:[%s134_s30] sm:$0xff]  ;;  %v156_v1 = vld [vmem:[%s134_s30 + $0x8] sm:$0xff] }
  0x28   : > { %s173_s2 = sshll.u32 %s153_s26, 4  ;;  %s170_s3 = sadd.s32 %s476_s9, %s276_s17  ;;  %155 = vst [vmem:[%s153_s26] ss:$2 sm:$0xff] %v154_v0  ;;  %s174_s2 = int_to_ptr.vmem [resolvable:$true] %s173_s2 }
  0x29   : > { %s277_s4 = sshll.u32 %s170_s3, 3  ;;  %274 = vst [vmem:[%s153_s26 + $0x1] ss:$2 sm:$0xff] %v156_v1  ;;  %s160_s21 = scalar_lea.sflag [#allocation4], %s600_s28 }
  0x2a   : > { %s172_s15 = scalar_lea.hbm %s653_s1, %s277_s4  ;;  %s414_s24 = scalar_lea.hbm %s653_s1, 128 }
  0x2b   : > { %s175_s19 = sshll.u32 %s172_s15, 4  ;;  %s176_s19 = int_to_ptr.hbm [resolvable:$true] %s175_s19 }
  0x2c   : > { %s408_s23 = sshra.s32 %s176_s19, 4  ;;  %s409_s23 = int_to_ptr.hbm [resolvable:$true] %s408_s23 }
  0x2d   : > { %s410_s10 = scalar_lea.hbm %s409_s23, 16  ;;  %p415_p7 = scmp.lt.s32.totalorder %s409_s23, %s653_s1 }
  0x2e   : > { %p411_p3 = scmp.ne.s32.totalorder %s409_s23, %s410_s10  ;;  %p416_p8 = scmp.lt.s32.totalorder %s414_s24, %s410_s10 }
  0x30   : > { %p412_p5 = pnand %p411_p3, %p575_p9  ;;  %p417_p10 = por %p416_p8, %p415_p7 }
  0x32   : > { %p413_p6 = pneg %p412_p5 }
  0x34   : > { %p418_p11 = pnand %p417_p10, %p413_p6 }
  0x36   : > { %421 = shalt.err (!%p418_p11)
}
  0x37   : > { %s497_s28 = smov 128   ;;  %s498_s30 = smov 512  }
  0x38   : > { %s499_s17 = smov 8  }
  0x39   : > { %282 = dma.vmem_to_hbm [thread:$0]  (%p575_p9), %s174_s2, 256, %s176_s19, %s160_s21, %s497_s28, %s498_s30, %s499_s17  }
  0x3a PF: > { %p293_p13 = scmp.ge.s32.totalorder %s492_s13, 2  ;;  %s190_s26 = sand.u32 1, %s464_s6  }
  0x3b   : > { %s191_s3 = scalar_lea.sflag [#allocation4], %s190_s26 }
  0x3c   : > { %p289_p0 = pnand %p293_p13, %p581_p12 }
  0x3e   : > { %p290_p1 = pneg %p289_p0 }
  0x40   : > { %459 = dma.done.wait (%p290_p1), %s191_s3, 256  }
  0x41   : > { %461 = vsyncadd (%p290_p1), %s191_s3, 4294967040  ;;  %s17_s13 = sadd.s32 1, %s492_s13   ;;  %s660_s22 = sld [smem:[#allocation8_spill]] }
  0x42   : > { %p14_p2 = scmp.ge.s32.totalorder %s17_s13, 10   ;;  %s661_s6 = smov %s468_s7 }
  0x43   : > { %s662_s7 = smov %s472_s8  ;;  %s663_s8 = smov %s588_s27 }
  0x44   : > { %s664_s9 = smov %s484_s11  ;;  %s665_s10 = smov %s488_s12 }
  0x45   : > { %s666_s11 = smov %s669_s16  ;;  %16 = sbr.rel (!%p14_p2) target bundleno = 7 (0x7), region = 70 }
  0x47   : > { %s667_s12 = smov %s660_s22 }
  0x4a   :  { %197 = vsyncpa [#allocation3], 1 }
  0x4b   :  { %199 = vsyncpa [#allocation3 + $0x1], 1 }
  0x4c   :  { %200 = vsyncpa [#allocation4], 1 }
  0x4d   :  { %202 = vsyncpa [#allocation4 + $0x1], 1 }

// kernel: tpu_custom_call.1
= control target key start
LH: loop header
LB: loop body
LE: loop exit
PB: predicated region body
PF: predicated region fallthrough
CT: control target
= control target key end

     0   :  { %6 = vsyncpa [#allocation3], 0  ;;  %s748_s0 = inlined_call_operand.hbm [shape: f32[2,16,512], index: 0, kind: input, shape index: {}]   ;;  %s749_s1 = inlined_call_operand.hbm [shape: f32[2,16,512], index: 1, kind: output, shape index: {}]  }
   0x1   :  { %8 = vsyncpa [#allocation3 + $0x1], 0 }
   0x2   :  { %9 = vsyncpa [#allocation4], 0 }
   0x3   :  { %11 = vsyncpa [#allocation4 + $0x1], 0  ;;  %s592_s6 = smov 0   ;;  %s594_s7 = smov 0  }
   0x4   :  { %s596_s8 = smov 0   ;;  %s598_s9 = smov 0  }
   0x5   :  { %s600_s10 = smov 0   ;;  %s602_s11 = smov 0  }
   0x6   :  { %s604_s12 = smov 0   ;;  %s606_s13 = smov 0  }
   0x7 LB: > { %s343_s14 = sadd.s32 4294967295, %s572_s13   ;;  %s344_s15 = sadd.s32 4294967294, %s572_s13   ;;  %s572_s13 = sphi %s606_s13, %s17_s13   ;;  %s568_s12 = sphi %s604_s12, %s763_s12   ;;  %s564_s11 = sphi %s602_s11, %s762_s11   ;;  %s560_s10 = sphi %s600_s10, %s761_s10   ;;  %s556_s9 = sphi %s598_s9, %s760_s9   ;;  %s552_s8 = sphi %s596_s8, %s759_s8   ;;  %s548_s7 = sphi %s594_s7, %s758_s7   ;;  %s544_s6 = sphi %s592_s6, %s757_s6  }
   0x8   : > { %s26_s16 = sadd.s32 1, %s564_s11  ;;  %s29_s17 = sadd.s32 1, %s568_s12 }
   0x9   : > { %p27_p0 = scmp.ge.s32.totalorder %s26_s16, 4  ;;  %s38_s18 = sadd.s32 1, %s552_s8 }
   0xa   : > { %p45_p1 = scmp.ne.s32.totalorder %s552_s8, %s548_s7  ;;  %p46_p2 = scmp.eq.s32.totalorder %s572_s13, 0 }
   0xb   : > { %s765_s16 = smov (%p27_p0, %s26_s16), 0  ;;  %s767_s17 = smov (!%p27_p0, %s29_s17), %s568_s12 }
   0xc   : > { %s34_s19 = ssub.s32 %s564_s11, %s765_s16  ;;  %p645_p3 = por %p46_p2, %p45_p1 }
   0xd   : > { %p31_p4 = scmp.ge.s32.totalorder %s767_s17, 2  ;;  %p51_p5 = scmp.ne.s32.totalorder %s548_s7, %s544_s6 }
   0xe   : > { %p52_p6 = scmp.eq.s32.totalorder %s343_s14, 0  ;;  %p77_p7 = scmp.eq.s32.totalorder %s343_s14, 7 }
   0xf   : > { %s769_s17 = smov (%p31_p4, %s767_s17), 0  ;;  %p83_p10 = scmp.eq.s32.totalorder %s344_s15, 7 }
  0x10   : > { %752 = sst [smem:[#allocation8_spill]] %s769_s17  ;;  %p653_p8 = por %p52_p6, %p51_p5 }
  0x11   : > { %p657_p9 = por %p77_p7, %p45_p1  ;;  %s33_s23 = ssub.s32 %s568_s12, %s769_s17 }
  0x12   : > { %s35_s24 = sor.u32 %s34_s19, %s33_s23  ;;  %p663_p12 = por %p83_p10, %p51_p5 }
  0x13   : > { %p36_p11 = scmp.eq.s32.totalorder %s35_s24, 0  ;;  %p370_p13 = scmp.lt.s32.totalorder %s572_s13, 8 }
  0x14   : > { %s103_s26 = sand.u32 1, %s552_s8   ;;  %s348_s29 = sshll.u32 %s568_s12, 3 }
  0x15   : > { %s670_s27 = scalar_select %p36_p11, %s552_s8, %s38_s18  }
  0x16   : > { %s347_s28 = sshll.u32 %s103_s26, 4  ;;  %s111_s30 = sadd.s32 %s564_s11, %s348_s29 }
  0x17   : > { %s107_s2 = scalar_lea.vmem [#allocation2], %s347_s28  ;;  %s349_s4 = sshll.u32 %s111_s30, 3 }
  0x18   : > { %s116_s3 = sshll.u32 %s107_s2, 4  ;;  %s113_s15 = scalar_lea.hbm %s748_s0, %s349_s4  ;;  %s117_s3 = int_to_ptr.vmem [resolvable:$true] %s116_s3 }
  0x19   : > { %p363_p0 = pnand %p370_p13, %p645_p3  ;;  %s114_s19 = sshll.u32 %s113_s15, 4  ;;  %s115_s19 = int_to_ptr.hbm [resolvable:$true] %s114_s19 }
  0x1a   : > { %s104_s23 = scalar_lea.sflag [#allocation3], %s103_s26  ;;  %s574_s18 = smov 512  }
  0x1b   : > { %s575_s24 = smov 128   ;;  %s576_s17 = smov 8  }
  0x1c   : > { %365 = dma.hbm_to_vmem [thread:$0]  (!%p363_p0), %s115_s19, 256, %s117_s3, %s104_s23, %s574_s18, %s575_s24, %s576_s17  }
  0x1d   : > { %p350_p1 = scmp.ge.s32.totalorder %s572_s13, 1  ;;  %p124_p2 = scmp.lt.s32.totalorder %s572_s13, 9 }
  0x1f   : > { %p125_p4 = pnand %p350_p1, %p124_p2 }
  0x20   : > { %s682_s28 = sand.u32 (!%p125_p4), 1, %s548_s7  }
  0x21   : > { %128 = sbr.rel (%p125_p4) target bundleno = 71 (0x47), region = 24  ;;  %s351_s20 = sshll.u32 (!%p125_p4), %s682_s28, 4 }
  0x22   : > { %s131_s29 = scalar_lea.sflag (!%p125_p4), [#allocation3], %s682_s28  ;;  %s134_s30 = scalar_lea.vmem (!%p125_p4), [#allocation2], %s351_s20 }
  0x26   : > { %535 = dma.done.wait (%p653_p8), %s131_s29, 256  }
  0x27   : > { %537 = vsyncadd (%p653_p8), %s131_s29, 4294967040  ;;  %v577_v0 = vmov 1983009808   ;;  %v578_v3 = vmov 1934713408   ;;  %v154_v5 = vld [vmem:[%s134_s30] sm:$0xff] }
  0x28   : > { %v160_v1 = vunpack.c.l.s4 %v577_v0  ;;  %v182_v4 = vunpack.c.l.s4 %v578_v3  ;;  %v155_v6 = vld [vmem:[%s134_s30 + $0x8] sm:$0xff]  ;;  %vm157_vm0 = vcmask 1047556   ;;  %v156_v7 = vrot.slane %v154_v5, 4  ;;  %s354_s17 = sshll.u32 %s560_s10, 3  ;;  %s239_s14 = scalar_lea.sflag [#allocation4], %s682_s28 }
  0x29   : > { %v167_v9 = vrot.slane %v155_v6, 4  ;;  %s249_s21 = sadd.s32 %s556_s9, %s354_s17  ;;  %s153_s9 = scalar_lea.vmem [#allocation5], %s351_s20 }
  0x2a   : > { %v161_v2 = vunpack.c.0.s8 %v160_v1  ;;  %v183_v11 = vunpack.c.0.s8 %v182_v4  ;;  %v158_v14 = vsel %vm157_vm0, 0.0, %v156_v7  ;;  %s355_s10 = sshll.u32 %s249_s21, 3  ;;  %s252_s4 = sshll.u32 %s153_s9, 4  ;;  %s253_s4 = int_to_ptr.vmem [resolvable:$true] %s252_s4 }
  0x2b   : > { %v168_v15 = vsel %vm157_vm0, 0.0, %v167_v9  ;;  %s251_s3 = scalar_lea.hbm %s749_s1, %s355_s10  ;;  %s494_s24 = scalar_lea.hbm %s749_s1, 128 }
  0x2c   : > { %v162_v8 = vperm.slane %v154_v5, %v161_v2  ;;  %v172_v10 = vperm.slane %v155_v6, %v161_v2  ;;  %v166_v16 = vperm.slane %v158_v14, %v161_v2  ;;  %v176_v17 = vperm.slane %v168_v15, %v161_v2  ;;  %s254_s5 = sshll.u32 %s251_s3, 4  ;;  %s255_s5 = int_to_ptr.hbm [resolvable:$true] %s254_s5 }
  0x2d   : > { %s488_s15 = sshra.s32 %s255_s5, 4  ;;  %s489_s15 = int_to_ptr.hbm [resolvable:$true] %s488_s15 }
  0x2e   : > { %v177_v12 = vrot.slane %v172_v10, 4  ;;  %v179_v13 = vrot.slane %v162_v8, 4  ;;  %v189_v22 = vrot.slane %v176_v17, 4  ;;  %v191_v23 = vrot.slane %v166_v16, 4  ;;  %s490_s19 = scalar_lea.hbm %s489_s15, 16  ;;  %p495_p7 = scmp.lt.s32.totalorder %s489_s15, %s749_s1 }
  0x2f   : > { %p491_p3 = scmp.ne.s32.totalorder %s489_s15, %s490_s19  ;;  %p496_p8 = scmp.lt.s32.totalorder %s494_s24, %s490_s19 }
  0x30   : > { %v178_v18 = vsel %vm157_vm0, %v177_v12, %v162_v8  ;;  %v180_v19 = vsel %vm157_vm0, %v172_v10, %v179_v13  ;;  %v190_v26 = vsel %vm157_vm0, %v189_v22, %v166_v16  ;;  %v192_v27 = vsel %vm157_vm0, %v176_v17, %v191_v23 }
  0x31   : > { %v184_v20 = vperm.slane %v178_v18, %v183_v11  ;;  %v188_v21 = vperm.slane %v180_v19, %v183_v11  ;;  %v196_v28 = vperm.slane %v190_v26, %v183_v11  ;;  %v200_v29 = vperm.slane %v192_v27, %v183_v11  ;;  %p492_p5 = pnand %p491_p3, %p657_p9  ;;  %p497_p10 = por %p496_p8, %p495_p7 }
  0x33   : > { %217 = vst [vmem:[#allocation1] ss:$4 sm:$0xff] %v184_v20  ;;  %v201_v24 = vrot.slane %v184_v20, 4  ;;  %v203_v25 = vrot.slane %v188_v21, 4  ;;  %v205_v32 = vrot.slane %v196_v28, 4  ;;  %v207_v33 = vrot.slane %v200_v29, 4  ;;  %p493_p6 = pneg %p492_p5 }
  0x34   : > { %221 = vst [vmem:[#allocation1 + $0x2] ss:$4 sm:$0xff] %v188_v21 }
  0x35   : > { %v202_v30 = vsel %vm157_vm0, 0.0, %v201_v24  ;;  %v204_v31 = vsel %vm157_vm0, 0.0, %v203_v25  ;;  %225 = vst [vmem:[#allocation1 + $0x20] ss:$4 sm:$0xff] %v196_v28  ;;  %v206_v34 = vsel %vm157_vm0, 0.0, %v205_v32  ;;  %v208_v35 = vsel %vm157_vm0, 0.0, %v207_v33  ;;  %p498_p11 = pnand %p497_p10, %p493_p6 }
  0x36   : > { %219 = vst [vmem:[#allocation1 + $0x1] ss:$4 sm:$0xff] %v202_v30 }
  0x37   : > { %223 = vst [vmem:[#allocation1 + $0x3] ss:$4 sm:$0xff] %v204_v31 }
  0x38   : > { %227 = vst [vmem:[#allocation1 + $0x21] ss:$4 sm:$0xff] %v206_v34 }
  0x39   : > { %229 = vst [vmem:[#allocation1 + $0x22] ss:$4 sm:$0xff] %v200_v29 }
  0x3a   : > { %231 = vst [vmem:[#allocation1 + $0x23] ss:$4 sm:$0xff] %v208_v35 }
  0x3e   : > { %v232_v36 = vld.sshfl [vmem:[#allocation1] sm:$0xff pattern:$0x73625140] }
  0x3f   : > { %236 = vst [vmem:[%s153_s9] sm:$0xff] %v232_v36 }
  0x41   : > { %v233_v37 = vld.sshfl [vmem:[#allocation1 + $0x20] sm:$0xff pattern:$0x73625140] }
  0x42   : > { %237 = vst [vmem:[%s153_s9 + $0x8] sm:$0xff] %v233_v37 }
  0x43   : > { %501 = shalt.err (!%p498_p11)
}
  0x44   : > { %s579_s28 = smov 128   ;;  %s580_s30 = smov 512  }
  0x45   : > { %s581_s17 = smov 8  }
  0x46   : > { %360 = dma.vmem_to_hbm [thread:$0]  (%p657_p9), %s253_s4, 256, %s255_s5, %s239_s14, %s579_s28, %s580_s30, %s581_s17  }
  0x47 PF: > { %p371_p13 = scmp.ge.s32.totalorder %s572_s13, 2  ;;  %s269_s21 = sand.u32 1, %s544_s6  }
  0x48   : > { %s270_s10 = scalar_lea.sflag [#allocation4], %s269_s21 }
  0x49   : > { %p367_p0 = pnand %p371_p13, %p663_p12 }
  0x4b   : > { %p368_p1 = pneg %p367_p0 }
  0x4d   : > { %539 = dma.done.wait (%p368_p1), %s270_s10, 256  }
  0x4e   : > { %541 = vsyncadd (%p368_p1), %s270_s10, 4294967040  ;;  %s17_s13 = sadd.s32 1, %s572_s13   ;;  %s756_s22 = sld [smem:[#allocation8_spill]] }
  0x4f   : > { %p14_p2 = scmp.ge.s32.totalorder %s17_s13, 10   ;;  %s757_s6 = smov %s548_s7 }
  0x50   : > { %s758_s7 = smov %s552_s8  ;;  %s759_s8 = smov %s670_s27 }
  0x51   : > { %s760_s9 = smov %s564_s11  ;;  %s761_s10 = smov %s568_s12 }
  0x52   : > { %s762_s11 = smov %s765_s16  ;;  %16 = sbr.rel (!%p14_p2) target bundleno = 7 (0x7), region = 76 }
  0x54   : > { %s763_s12 = smov %s756_s22 }
  0x57   :  { %276 = vsyncpa [#allocation3], 1 }
  0x58   :  { %278 = vsyncpa [#allocation3 + $0x1], 1 }
  0x59   :  { %279 = vsyncpa [#allocation4], 1 }
  0x5a   :  { %281 = vsyncpa [#allocation4 + $0x1], 1 }

</bundles_post_ra>
